<compile_context>
chip_gen: v7x
topology: tpu7x:2x2x1
jax: 0.10.0
libtpu: 0.0.40
codegen_flags: <defaults>
</compile_context>

<pallas_src>
import functools

import jax
import jax.numpy as jnp
from jax.experimental import pallas as pl
from jax.experimental.pallas import tpu as pltpu


# ----------------------------------------------------------------------------
# Tiled linear projection: y = x @ W + b
# ----------------------------------------------------------------------------
def linear_kernel(x_ref, w_ref, b_ref, o_ref, acc_ref):
    # x: (tm, tk), w: (tk, tn), b: (1, tn), o: (tm, tn), acc: (tm, tn) f32
    @pl.when(pl.program_id(2) == 0)
    def _():
        acc_ref[...] = jnp.zeros_like(acc_ref)

    acc_ref[...] += jnp.dot(
        x_ref[...], w_ref[...], preferred_element_type=jnp.float32
    )

    @pl.when(pl.program_id(2) == pl.num_programs(2) - 1)
    def _():
        o_ref[...] = (acc_ref[...] + b_ref[...]).astype(o_ref.dtype)


def _pick_tile(dim, target, align):
    """Largest tile <= target that is a multiple of `align` and divides `dim`,
    falling back to the full dimension (always legal: block == array dim)."""
    if dim <= target:
        return dim
    t = (target // align) * align
    while t >= align:
        if dim % t == 0:
            return t
        t -= align
    return dim


def linear(x, w, b, *, compute_dtype=jnp.float32, out_dtype=jnp.float32,
           tm=256, tn=256, tk=512):
    m, kdim = x.shape
    n = w.shape[1]
    tm = _pick_tile(m, tm, 8)      # sublane-aligned
    tn = _pick_tile(n, tn, 128)    # lane-aligned
    tk = _pick_tile(kdim, tk, 128)
    grid = (m // tm, n // tn, kdim // tk)

    x = x.astype(compute_dtype)
    w = w.astype(compute_dtype)
    b2 = b.reshape(1, n).astype(jnp.float32)

    return pl.pallas_call(
        linear_kernel,
        out_shape=jax.ShapeDtypeStruct((m, n), out_dtype),
        grid_spec=pltpu.PrefetchScalarGridSpec(
            num_scalar_prefetch=0,
            grid=grid,
            in_specs=[
                pl.BlockSpec((tm, tk), lambda i, j, k: (i, k)),
                pl.BlockSpec((tk, tn), lambda i, j, k: (k, j)),
                pl.BlockSpec((1, tn), lambda i, j, k: (0, j)),
            ],
            out_specs=pl.BlockSpec((tm, tn), lambda i, j, k: (i, j)),
            scratch_shapes=[pltpu.VMEM((tm, tn), jnp.float32)],
        ),
        compiler_params=pltpu.CompilerParams(
            dimension_semantics=("parallel", "parallel", "arbitrary"),
            vmem_limit_bytes=48 * 1024 * 1024,  # headroom under v7x's 64 MiB VMEM
        ),
    )(x, w, b2)


# ----------------------------------------------------------------------------
# Attention core: grid (batch, Tq tiles); all heads processed inside one step.
# ----------------------------------------------------------------------------
def attn_kernel(q_ref, kv_ref, kpb_ref, amb_ref, o_ref, w_ref, *,
                num_heads, head_dim, embed_dim, approx_recip):
    # q: (1, tq, E) already scaled by 1/sqrt(D); kv: (1, Tk, 2E) = [K | V]
    # kpb: (1, Tk) f32 key-padding bias; amb: (tq, Tk) f32 attn-mask bias
    q = q_ref[0]
    kv = kv_ref[0]
    bias = kpb_ref[...] + amb_ref[...]        # (1,Tk) broadcast + (tq,Tk)

    ctx_parts = []
    w_acc = None
    for h in range(num_heads):  # statically unrolled; each head hits the MXU
        lo = h * head_dim
        qh = q[:, lo:lo + head_dim]
        kh = kv[:, lo:lo + head_dim]
        vh = kv[:, embed_dim + lo:embed_dim + lo + head_dim]

        # QK^T without materializing a transpose: contract last dims of both.
        s = jax.lax.dot_general(
            qh, kh, (((1,), (1,)), ((), ())),
            preferred_element_type=jnp.float32,
        ) + bias

        m = jnp.max(s, axis=-1, keepdims=True)
        p = jnp.exp(s - m)
        denom = jnp.sum(p, axis=-1, keepdims=True)
        wh = p * pl.reciprocal(denom, approx=approx_recip)

        w_acc = wh if w_acc is None else w_acc + wh
        ctx_parts.append(
            jnp.dot(wh.astype(vh.dtype), vh, preferred_element_type=jnp.float32))

    # Single lane-dense (tq, E) store instead of H narrow masked stores.
    o_ref[0] = jnp.concatenate(ctx_parts, axis=-1).astype(o_ref.dtype)
    # Head-averaged weights written once: (tq, Tk) instead of (H, tq, Tk).
    w_ref[0] = w_acc * (1.0 / num_heads)


def attention_core(q_bt, kv_bt, kp_bias, attn_bias, num_heads, *,
                   approx_recip=True, out_dtype=jnp.float32, tq_target=256):
    # q_bt: (B, Tq, E), kv_bt: (B, Tk, 2E), kp_bias: (B, Tk), attn_bias: (Tq, Tk)
    B, Tq, E = q_bt.shape
    Tk = kv_bt.shape[1]
    D = E // num_heads
    tq = _pick_tile(Tq, tq_target, 8)
    nq = Tq // tq

    kernel = functools.partial(
        attn_kernel, num_heads=num_heads, head_dim=D, embed_dim=E,
        approx_recip=approx_recip)

    ctx, weights = pl.pallas_call(
        kernel,
        out_shape=(
            jax.ShapeDtypeStruct((B, Tq, E), out_dtype),
            jax.ShapeDtypeStruct((B, Tq, Tk), jnp.float32),
        ),
        grid_spec=pltpu.PrefetchScalarGridSpec(
            num_scalar_prefetch=0,
            grid=(B, nq),
            in_specs=[
                pl.BlockSpec((1, tq, E), lambda b, i: (b, i, 0)),
                pl.BlockSpec((1, Tk, 2 * E), lambda b, i: (b, 0, 0)),
                pl.BlockSpec((1, Tk), lambda b, i: (b, 0)),
                pl.BlockSpec((tq, Tk), lambda b, i: (i, 0)),  # shared over batch
            ],
            out_specs=[
                pl.BlockSpec((1, tq, E), lambda b, i: (b, i, 0)),
                pl.BlockSpec((1, tq, Tk), lambda b, i: (b, i, 0)),
            ],
        ),
        compiler_params=pltpu.CompilerParams(
            dimension_semantics=("parallel", "parallel"),  # megacore-shardable
            vmem_limit_bytes=48 * 1024 * 1024,
        ),
    )(q_bt, kv_bt, kp_bias, attn_bias)
    return ctx, weights


# ----------------------------------------------------------------------------
# EncDecAttention forward (fairseq MultiheadAttention, encoder-decoder attention,
# dropout=0, q_noise=0, need_weights=True)
# ----------------------------------------------------------------------------
def enc_dec_attention(
    dec_query,
    enc_key_value,
    params,
    num_heads,
    key_padding_mask=None,   # (B, T_k) bool, True = pad (excluded)
    attn_mask=None,          # (T_q, T_k) bool, True = masked out
    compute_dtype=jnp.float32,   # use jnp.bfloat16 on v6e/v7x for MXU throughput
    approx_recip=True,
):
    Tq, B, E = dec_query.shape
    Tk = enc_key_value.shape[0]
    assert E % num_heads == 0
    D = E // num_heads
    scale = D ** -0.5

    # Batch-first activations so the attention kernel's blocks are (1, T, E)
    # (lane-dense last dim) and no 4-D head-split transposes are needed.
    q_in = dec_query.transpose(1, 0, 2).reshape(B * Tq, E)
    kv_in = enc_key_value.transpose(1, 0, 2).reshape(B * Tk, E)

    # Fold the 1/sqrt(D) query scaling into the Q projection (fairseq scales q
    # immediately after the projection, so this is mathematically identical).
    wq = params["wq"] * scale
    bq = params["bq"] * scale
    # Fuse K and V projections (same input tensor) into one (E, 2E) matmul.
    wkv = jnp.concatenate([params["wk"], params["wv"]], axis=1)
    bkv = jnp.concatenate([params["bk"], params["bv"]])

    q = linear(q_in, wq, bq, compute_dtype=compute_dtype,
               out_dtype=compute_dtype).reshape(B, Tq, E)
    kv = linear(kv_in, wkv, bkv, compute_dtype=compute_dtype,
                out_dtype=compute_dtype).reshape(B, Tk, 2 * E)

    # Tiny additive-bias inputs (no (B,Tq,Tk) materialization in HBM).
    neg = jnp.float32(-1e30)
    if key_padding_mask is not None:
        kp_bias = jnp.where(key_padding_mask, neg, 0.0).astype(jnp.float32)
    else:
        kp_bias = jnp.zeros((B, Tk), jnp.float32)
    if attn_mask is not None:
        attn_bias = jnp.where(attn_mask, neg, 0.0).astype(jnp.float32)
    else:
        attn_bias = jnp.zeros((Tq, Tk), jnp.float32)

    # Attention core (grid over batch x Tq tiles, heads batched inside).
    ctx, attn_weights = attention_core(
        q, kv, kp_bias, attn_bias, num_heads,
        approx_recip=approx_recip, out_dtype=compute_dtype)

    # Output projection, then back to Time-first (T_q, B, E).
    out = linear(ctx.reshape(B * Tq, E), params["wo"], params["bo"],
                 compute_dtype=compute_dtype,
                 out_dtype=jnp.float32).reshape(B, Tq, E)
    out = out.transpose(1, 0, 2)

    # attn_weights already head-averaged inside the kernel: (B, Tq, Tk).
    return out, attn_weights


def init_params(key, embed_dim):
    # Deterministic synthetic init (xavier-ish scale); W stored as (in, out),
    # i.e. y = x @ W + b  (equivalent to torch Linear with W_torch = W.T).
    ks = jax.random.split(key, 4)
    std = 1.0 / jnp.sqrt(embed_dim)

    def w(k):
        return jax.random.normal(k, (embed_dim, embed_dim), jnp.float32) * std

    return {
        "wq": w(ks[0]), "bq": jnp.zeros((embed_dim,), jnp.float32),
        "wk": w(ks[1]), "bk": jnp.zeros((embed_dim,), jnp.float32),
        "wv": w(ks[2]), "bv": jnp.zeros((embed_dim,), jnp.float32),
        "wo": w(ks[3]), "bo": jnp.zeros((embed_dim,), jnp.float32),
    }


# ----------------------------------------------------------------------------
# Pure-JAX reference for a sanity check
# ----------------------------------------------------------------------------
def reference(dec_query, enc_key_value, params, num_heads,
              key_padding_mask=None, attn_mask=None):
    Tq, B, E = dec_query.shape
    Tk = enc_key_value.shape[0]
    D = E // num_heads
    q = dec_query.reshape(Tq * B, E) @ params["wq"] + params["bq"]
    k = enc_key_value.reshape(Tk * B, E) @ params["wk"] + params["bk"]
    v = enc_key_value.reshape(Tk * B, E) @ params["wv"] + params["bv"]
    qh = q.reshape(Tq, B, num_heads, D).transpose(1, 2, 0, 3) * (D ** -0.5)
    kh = k.reshape(Tk, B, num_heads, D).transpose(1, 2, 0, 3)
    vh = v.reshape(Tk, B, num_heads, D).transpose(1, 2, 0, 3)
    s = jnp.einsum("bhqd,bhkd->bhqk", qh, kh)
    if attn_mask is not None:
        s = s + jnp.where(attn_mask, -1e30, 0.0)[None, None, :, :]
    if key_padding_mask is not None:
        s = s + jnp.where(key_padding_mask, -1e30, 0.0)[:, None, None, :]
    w = jax.nn.softmax(s, axis=-1)
    ctx = jnp.einsum("bhqk,bhkd->bhqd", w, vh)
    ctx = ctx.transpose(2, 0, 1, 3).reshape(Tq * B, E)
    out = (ctx @ params["wo"] + params["bo"]).reshape(Tq, B, E)
    return out, jnp.mean(w, axis=1)


if __name__ == "__main__":
    key = jax.random.PRNGKey(0)
    kq, kkv, kp, km = jax.random.split(key, 4)

    T_q, T_k, B, E, H = 8, 10, 2, 32, 4

    dec_query = jax.random.normal(kq, (T_q, B, E), jnp.float32)
    enc_key_value = jax.random.normal(kkv, (T_k, B, E), jnp.float32)
    params = init_params(kp, E)

    # key_padding_mask: pad out the last 2 source positions of batch element 1.
    key_padding_mask = jnp.zeros((B, T_k), dtype=bool).at[1, -2:].set(True)
    # attn_mask: simple cross-attention mask (query i may only see keys j <= i+2).
    attn_mask = (jnp.arange(T_k)[None, :] > (jnp.arange(T_q)[:, None] + 2))

    # --- precise path: f32 MXU operands + exact reciprocal -> tight check -----
    out, attn_w = enc_dec_attention(
        dec_query, enc_key_value, params, H,
        key_padding_mask=key_padding_mask, attn_mask=attn_mask,
        compute_dtype=jnp.float32, approx_recip=False)
    out = jax.block_until_ready(out)
    attn_w = jax.block_until_ready(attn_w)

    ref_out, ref_w = reference(
        dec_query, enc_key_value, params, H,
        key_padding_mask=key_padding_mask, attn_mask=attn_mask)
    assert out.shape == (T_q, B, E)
    assert attn_w.shape == (B, T_q, T_k)
    assert jnp.allclose(out, ref_out, atol=1e-4, rtol=1e-4)
    assert jnp.allclose(attn_w, ref_w, atol=1e-5, rtol=1e-5)

    # --- fast path: bf16 MXU operands + EUP approx reciprocal -> loose check --
    out_f, attn_w_f = enc_dec_attention(
        dec_query, enc_key_value, params, H,
        key_padding_mask=key_padding_mask, attn_mask=attn_mask,
        compute_dtype=jnp.bfloat16, approx_recip=True)
    out_f = jax.block_until_ready(out_f)
    attn_w_f = jax.block_until_ready(attn_w_f)
    assert bool(jnp.all(jnp.isfinite(out_f)))
    assert bool(jnp.all(jnp.isfinite(attn_w_f)))
    assert jnp.allclose(out_f, ref_out, atol=1e-1, rtol=1e-1)

    print("KERNEL_OK")
</pallas_src>

<mosaic_0001>
module attributes {stable_mosaic.version = 11 : i64} {
  func.func @linear_kernel(%arg0: i32, %arg1: i32, %arg2: i32, %arg3: memref<16x32xf32, #tpu.memory_space<vmem>>, %arg4: memref<32x32xf32, #tpu.memory_space<vmem>>, %arg5: memref<1x32xf32, #tpu.memory_space<vmem>>, %arg6: memref<16x32xf32, #tpu.memory_space<vmem>>, %arg7: memref<16x32xf32, #tpu.memory_space<vmem>>) attributes {dimension_semantics = [#tpu.dimension_semantics<parallel>, #tpu.dimension_semantics<parallel>, #tpu.dimension_semantics<arbitrary>], iteration_bounds = array<i64: 1, 1, 1>, scalar_prefetch = 0 : i64, scratch_operands = 1 : i64, tpu.core_type = #tpu.core_type<tc>, window_params = [{transform_indices = @transform_0, window_bounds = array<i64: 16, 32>}, {transform_indices = @transform_1, window_bounds = array<i64: 32, 32>}, {transform_indices = @transform_2, window_bounds = array<i64: 1, 32>}, {transform_indices = @transform_3, window_bounds = array<i64: 16, 32>}]} {
    %c0_i32 = arith.constant 0 : i32
    %0 = arith.cmpi eq, %arg2, %c0_i32 : i32
    %1 = arith.extui %0 : i1 to i32
    %c0_i32_0 = arith.constant 0 : i32
    %2 = arith.cmpi ne, %1, %c0_i32_0 : i32
    scf.if %2 {
      %cst_10 = arith.constant 0.000000e+00 : f32
      %12 = vector.broadcast %cst_10 : f32 to vector<16x32xf32>
      %c0_11 = arith.constant 0 : index
      %c0_12 = arith.constant 0 : index
      %13 = vector.load %arg7[%c0_11, %c0_12] : memref<16x32xf32, #tpu.memory_space<vmem>>, vector<16x32xf32>
      tpu.vector_store %arg7[%c0_11, %c0_12], %12 {strides = array<i32>} : memref<16x32xf32, #tpu.memory_space<vmem>>, vector<16x32xf32>,
    } else {
    }
    %c0 = arith.constant 0 : index
    %c0_1 = arith.constant 0 : index
    %3 = vector.load %arg7[%c0, %c0_1] : memref<16x32xf32, #tpu.memory_space<vmem>>, vector<16x32xf32>
    %c0_2 = arith.constant 0 : index
    %c0_3 = arith.constant 0 : index
    %4 = vector.load %arg3[%c0_2, %c0_3] : memref<16x32xf32, #tpu.memory_space<vmem>>, vector<16x32xf32>
    %c0_4 = arith.constant 0 : index
    %c0_5 = arith.constant 0 : index
    %5 = vector.load %arg4[%c0_4, %c0_5] : memref<32x32xf32, #tpu.memory_space<vmem>>, vector<32x32xf32>
    %cst = arith.constant dense<0.000000e+00> : vector<16x32xf32>
    %6 = tpu.matmul %4, %5, %cst {dimension_numbers = #tpu.dot_dimension_numbers<[1], [0], [0], [1], [0, 0, 1, 1], [], []>} : vector<16x32xf32>, vector<32x32xf32>, vector<16x32xf32> -> vector<16x32xf32>
    %7 = arith.addf %3, %6 : vector<16x32xf32>
    %c0_6 = arith.constant 0 : index
    %c0_7 = arith.constant 0 : index
    %8 = vector.load %arg7[%c0_6, %c0_7] : memref<16x32xf32, #tpu.memory_space<vmem>>, vector<16x32xf32>
    tpu.vector_store %arg7[%c0_6, %c0_7], %7 {strides = array<i32>} : memref<16x32xf32, #tpu.memory_space<vmem>>, vector<16x32xf32>,
    %c0_i32_8 = arith.constant 0 : i32
    %9 = arith.cmpi eq, %arg2, %c0_i32_8 : i32
    %10 = arith.extui %9 : i1 to i32
    %c0_i32_9 = arith.constant 0 : i32
    %11 = arith.cmpi ne, %10, %c0_i32_9 : i32
    scf.if %11 {
      %c0_10 = arith.constant 0 : index
      %c0_11 = arith.constant 0 : index
      %12 = vector.load %arg7[%c0_10, %c0_11] : memref<16x32xf32, #tpu.memory_space<vmem>>, vector<16x32xf32>
      %c0_12 = arith.constant 0 : index
      %c0_13 = arith.constant 0 : index
      %13 = vector.load %arg5[%c0_12, %c0_13] : memref<1x32xf32, #tpu.memory_space<vmem>>, vector<1x32xf32>
      %14 = vector.broadcast %13 : vector<1x32xf32> to vector<16x32xf32>
      %15 = arith.addf %12, %14 : vector<16x32xf32>
      %c0_14 = arith.constant 0 : index
      %c0_15 = arith.constant 0 : index
      %16 = vector.load %arg6[%c0_14, %c0_15] : memref<16x32xf32, #tpu.memory_space<vmem>>, vector<16x32xf32>
      tpu.vector_store %arg6[%c0_14, %c0_15], %15 {strides = array<i32>} : memref<16x32xf32, #tpu.memory_space<vmem>>, vector<16x32xf32>,
    } else {
    }
    return
  }
  func.func @transform_0(%arg0: i32, %arg1: i32, %arg2: i32) -> (i32, i32) {
    %c0_i32 = arith.constant 0 : i32
    return %arg0, %arg2 : i32, i32
  }
  func.func @transform_1(%arg0: i32, %arg1: i32, %arg2: i32) -> (i32, i32) {
    %c0_i32 = arith.constant 0 : i32
    return %arg2, %arg1 : i32, i32
  }
  func.func @transform_2(%arg0: i32, %arg1: i32, %arg2: i32) -> (i32, i32) {
    %c0_i32 = arith.constant 0 : i32
    %c0_i32_0 = arith.constant 0 : i32
    return %c0_i32, %arg1 : i32, i32
  }
  func.func @transform_3(%arg0: i32, %arg1: i32, %arg2: i32) -> (i32, i32) {
    %c0_i32 = arith.constant 0 : i32
    return %arg0, %arg1 : i32, i32
  }
}

</mosaic_0001>

<bundles_post_ra>
// kernel: tpu_custom_call.1
= control target key start
LH: loop header
LB: loop body
LE: loop exit
PB: predicated region body
PF: predicated region fallthrough
CT: control target
= control target key end

     0   :  { %8 = vsyncpa [#allocation4], 0  ;;  %s366_s0 = inlined_call_operand.hbm [shape: f32[16,32], index: 0, kind: input, shape index: {}]   ;;  %s367_s1 = inlined_call_operand.hbm [shape: f32[32,32], index: 1, kind: input, shape index: {}]   ;;  %s368_s2 = inlined_call_operand.vmem [shape: f32[1,32], index: 2, kind: input, shape index: {}]   ;;  %s369_s3 = inlined_call_operand.hbm [shape: f32[16,32], index: 3, kind: output, shape index: {}]  }
   0x1   :  { %9 = vsyncpa [#allocation7], 0 }
   0x2   :  { %10 = vsyncpa [#allocation5], 0  ;;  %s284_s12 = smov [#allocation3]   ;;  %s212_s16 = scalar_lea.hbm %s366_s0, 256 }
   0x3   :  { %s16_s13 = sshll.u32 %s284_s12, 4  ;;  %p213_p0 = scmp.ne.s32.totalorder %s366_s0, %s212_s16  ;;  %s17_s13 = int_to_ptr.vmem [resolvable:$true] %s16_s13 }
   0x4   :  { %p216_p1 = scmp.lt.u32.totalorder %s212_s16, %s366_s0 }
   0x6   :  { %p218_p2 = pnand %p216_p1, %p213_p0 }
   0x8   :  { %221 = shalt.err (!%p218_p2)
}
   0x9   :  { %s222_s21 = scalar_lea.vmem %s17_s13, 256  ;;  %p227_p4 = scmp.lt.s32.totalorder %s17_s13, %s17_s13 }
   0xa   :  { %p223_p3 = scmp.ne.s32.totalorder %s17_s13, %s222_s21  ;;  %p228_p5 = scmp.lt.s32.totalorder %s222_s21, %s222_s21 }
   0xc   :  { %p229_p6 = por %p228_p5, %p227_p4 }
   0xe   :  { %p230_p7 = pnand %p229_p6, %p223_p3 }
  0x10   :  { %233 = shalt.err (!%p230_p7)
}
  0x11   :  { %s285_s22 = smov 128   ;;  %s286_s23 = smov 8  }
  0x12   :  { %22 = dma.hbm_to_vmem [thread:$0]  %s366_s0, 256, %s17_s13, [#allocation4], %s285_s22, %s285_s22, %s286_s23  }
  0x13   :  { %s287_s26 = smov [#allocation6]   ;;  %s234_s30 = scalar_lea.hbm %s367_s1, 512 }
  0x14   :  { %s28_s27 = sshll.u32 %s287_s26, 4  ;;  %p235_p8 = scmp.ne.s32.totalorder %s367_s1, %s234_s30  ;;  %s29_s27 = int_to_ptr.vmem [resolvable:$true] %s28_s27 }
  0x15   :  { %p238_p9 = scmp.lt.u32.totalorder %s234_s30, %s367_s1 }
  0x17   :  { %p240_p10 = pnand %p238_p9, %p235_p8 }
  0x19   :  { %243 = shalt.err (!%p240_p10)
}
  0x1a   :  { %s244_s8 = scalar_lea.vmem %s29_s27, 512  ;;  %p249_p12 = scmp.lt.s32.totalorder %s29_s27, %s29_s27 }
  0x1b   :  { %p245_p11 = scmp.ne.s32.totalorder %s29_s27, %s244_s8  ;;  %p250_p13 = scmp.lt.s32.totalorder %s244_s8, %s244_s8 }
  0x1d   :  { %p251_p0 = por %p250_p13, %p249_p12 }
  0x1f   :  { %p252_p1 = pnand %p251_p0, %p245_p11 }
  0x21   :  { %255 = shalt.err (!%p252_p1)
}
  0x22   :  { %34 = dma.hbm_to_vmem [thread:$0]  %s367_s1, 512, %s29_s27, [#allocation7], %s285_s22, %s285_s22, %s286_s23  }
  0x23   :  { %278 = dma.done.wait [#allocation4], 256  }
  0x24   :  { %279 = vsyncadd [#allocation4], 4294967040 }
  0x25   :  { %280 = dma.done.wait [#allocation7], 512  }
  0x26   :  { %281 = vsyncadd [#allocation7], 4294966784  ;;  %vm47_vm0 = vcmask 261120   ;;  %v288_v0 = vmov 0.0   ;;  %v54_v1 = vld [vmem:[#allocation6] sm:$0xff]  ;;  %v55_v2 = vld [vmem:[#allocation6 + $0x8] sm:$0xff] }
  0x27   :  { %49 = vst.msk [vmem:[#allocation2 + $0x8] sm:$0xff] %vm47_vm0, %v288_v0  ;;  %48 = vst.msk [vmem:[#allocation2] sm:$0xff] %vm47_vm0, %v288_v0  ;;  %v56_v3 = vld [vmem:[#allocation6 + $0x10] sm:$0xff]  ;;  %v198_v4 = vpack.c.bf16 %v55_v2, %v54_v1  ;;  %v57_v5 = vld [vmem:[#allocation6 + $0x18] sm:$0xff]  ;;  %s289_s11 = smov [#allocation8]  }
  0x28   :  { %v52_v6 = vld [vmem:[#allocation3] sm:$0xff]  ;;  %v202_v7 = vpack.c.bf16 %v57_v5, %v56_v3  ;;  %v53_v8 = vld [vmem:[#allocation3 + $0x8] sm:$0xff]  ;;  %v180_v15 = vld [vmem:[%s368_s2] ss:$0 sm:$0xff]  ;;  %s165_s12 = sshll.u32 %s289_s11, 4  ;;  %s166_s12 = int_to_ptr.vmem [resolvable:$true] %s165_s12 }
  0x29   :  { %195 = vmatprep.mubr.msk.f32.mxu0 %vm47_vm0, %v52_v6  ;;  %199 = vmatprep.subr.bf16.mxu0 %v198_v4  ;;  %s256_s13 = scalar_lea.vmem %s166_s12, 256  ;;  %p261_p3 = scmp.lt.s32.totalorder %s166_s12, %s166_s12 }
  0x2a   :  { %201 = vmatpush3.bf16.msra.mxu0 %v198_v4  ;;  %p257_p2 = scmp.ne.s32.totalorder %s166_s12, %s256_s13  ;;  %p262_p4 = scmp.lt.s32.totalorder %s256_s13, %s256_s13 }
  0x2b   :  { %203 = vmatprep.subr.bf16.mxu0 %v202_v7 }
  0x2c   :  { %p263_p5 = por %p262_p4, %p261_p3 }
  0x2e   :  { %205 = vmatpush3.bf16.msra.mxu0 %v202_v7  ;;  %v51_v9 = vld [vmem:[#allocation2 + $0x8] sm:$0xff]  ;;  %v50_v10 = vld [vmem:[#allocation2] sm:$0xff]  ;;  %p264_p6 = pnand %p263_p5, %p257_p2 }
  0x31   :  { %196 = vmatmul.mubr.msk.f32.vlgmr.msra.gmra.mrb[0].mxu0 %vm47_vm0, %v53_v8 }
 0x104   :  { %v197_v11 = vpop.f32.mrb[0].mxu0 }
 0x105   :  { %v141_v12 = vadd.f32 %v197_v11, %v51_v9  ;;  %v131_v13 = vpop.f32.mrb[1].mxu0 }
 0x106   :  { %v140_v14 = vadd.f32 %v131_v13, %v50_v10 }
 0x107   :  { %143 = vst.msk [vmem:[#allocation2 + $0x8] sm:$0xff] %vm47_vm0, %v141_v12 }
 0x108   :  { %142 = vst.msk [vmem:[#allocation2] sm:$0xff] %vm47_vm0, %v140_v14 }
 0x10e   :  { %v148_v16 = vld [vmem:[#allocation2 + $0x8] sm:$0xff] }
 0x10f   :  { %v147_v17 = vld [vmem:[#allocation2] sm:$0xff]  ;;  %v157_v18 = vadd.f32 %v180_v15, %v148_v16 }
 0x110   :  { %v156_v19 = vadd.f32 %v180_v15, %v147_v17 }
 0x111   :  { %159 = vst.msk [vmem:[#allocation8 + $0x8] sm:$0xff] %vm47_vm0, %v157_v18 }
 0x112   :  { %158 = vst.msk [vmem:[#allocation8] sm:$0xff] %vm47_vm0, %v156_v19 }
 0x113   :  { %267 = shalt.err (!%p264_p6)
}
 0x114   :  { %s268_s15 = scalar_lea.hbm %s369_s3, 256 }
 0x115   :  { %p269_p7 = scmp.ne.s32.totalorder %s369_s3, %s268_s15  ;;  %p272_p8 = scmp.lt.u32.totalorder %s268_s15, %s369_s3 }
 0x117   :  { %p274_p9 = pnand %p272_p8, %p269_p7 }
 0x119   :  { %277 = shalt.err (!%p274_p9)
}
 0x11a   :  { %171 = dma.vmem_to_hbm [thread:$0]  %s166_s12, 256, %s369_s3, [#allocation5], %s285_s22, %s285_s22, %s286_s23  }
 0x11b   :  { %282 = dma.done.wait [#allocation5], 256  }
 0x11c   :  { %283 = vsyncadd [#allocation5], 4294967040 }
 0x11d   :  { %175 = vsyncpa [#allocation4], 1 }
 0x11e   :  { %176 = vsyncpa [#allocation7], 1 }
 0x11f   :  { %177 = vsyncpa [#allocation5], 1 }

</bundles_post_ra>
